<compile_context>
chip_gen: v5e
topology: v5e:2x2
jax: 0.10.0
libtpu: 0.0.40
codegen_flags: <defaults>
</compile_context>

<pallas_src>
import math
import functools

import jax
import jax.numpy as jnp
from jax import lax
from jax.experimental import pallas as pl
from jax.experimental.pallas import tpu as pltpu


def _round_up(n: int, m: int) -> int:
    return ((n + m - 1) // m) * m


def _attention_kernel(x_ref, wqkv_ref, wo_ref, bo_ref, o_ref, *,
                      batch: int, seq: int, num_heads: int, head_size: int,
                      out_size: int):
    B, S, H, Hd, D = batch, seq, num_heads, head_size, out_size

    # ---- fused QKV projection: one lane-dense GEMM on the MXU --------------
    # (B*S, Din) @ (Din, 3*Dout) -> (B*S, 3*Dout), f32 accumulation.
    x2d = x_ref[...]                                        # (B*S, Din) bf16
    qkv = jnp.dot(x2d, wqkv_ref[...], preferred_element_type=jnp.float32)

    # Q/K/V slabs at lane offsets 0 / Dout / 2*Dout ([allQ | allK | allV] packing).
    q2d = qkv[:, 0:D].astype(jnp.bfloat16)                  # (B*S, Dout)
    k2d = qkv[:, D:2 * D].astype(jnp.bfloat16)
    v2d = qkv[:, 2 * D:3 * D].astype(jnp.bfloat16)

    # Causal mask built once; large finite negative avoids inf-inf NaNs.
    row = lax.broadcasted_iota(jnp.int32, (S, S), 0)
    col = lax.broadcasted_iota(jnp.int32, (S, S), 1)
    causal = col > row
    neg = jnp.float32(-1e30)
    nt = (((1,), (1,)), ((), ()))        # contract last dims: q @ k^T without a transpose op

    # ---- per (batch, head) attention ---------------------------------------
    # B and H are tiny static constants here; this unrolled loop does the same
    # MXU work as a batched formulation while keeping every op a simple 2-D
    # slice / matmul (no relayout-heavy in-kernel reshapes or transposes).
    # TODO(synk): for production S, replace with a parallel Q-tile grid axis +
    # online-softmax KV loop (flash-style) instead of full (S, S) scores.
    batch_rows = []
    for b in range(B):
        ctx_heads = []
        for h in range(H):
            qh = q2d[b * S:(b + 1) * S, h * Hd:(h + 1) * Hd]   # (S, Hd)
            kh = k2d[b * S:(b + 1) * S, h * Hd:(h + 1) * Hd]
            vh = v2d[b * S:(b + 1) * S, h * Hd:(h + 1) * Hd]

            s = lax.dot_general(qh, kh, nt, preferred_element_type=jnp.float32)
            s = jnp.where(causal, neg, s)
            s = s - jnp.max(s, axis=-1, keepdims=True)
            p = jnp.exp(s)
            p = p * pl.reciprocal(jnp.sum(p, axis=-1, keepdims=True), approx=True)
            # TODO(synk): Dropout(p=0.1) is identity in eval mode; training-mode
            # RNG dropout (pltpu.prng_seed / prng_random_bits) omitted.

            ctx_heads.append(jnp.dot(p.astype(jnp.bfloat16), vh,
                                     preferred_element_type=jnp.float32))
        # Head-major lane concat: H x Hd lanes -> H*Hd lanes (one vreg width).
        batch_rows.append(jnp.concatenate(ctx_heads, axis=-1))     # (S, H*Hd)

    ctx2d = jnp.concatenate(batch_rows, axis=0).astype(jnp.bfloat16)  # (B*S, H*Hd)

    # ---- fused output projection: single GEMM (K = H*Hd) + bias ------------
    out = jnp.dot(ctx2d, wo_ref[...], preferred_element_type=jnp.float32)
    out = out + bo_ref[...]
    # Lane-dense store: output columns are padded to a multiple of 128.
    o_ref[...] = out.astype(o_ref.dtype)


def attention_forward(x, wq, wk, wv, wo, bo, *, num_heads: int):
    B, S, Din = x.shape
    Dout = wq.shape[1]
    H = num_heads
    Hd = Dout // H
    scale = 1.0 / math.sqrt(Hd)
    out_dtype = x.dtype

    # Host-side one-time prep:
    #  * fuse Q/K/V into one (Din, 3*Dout) weight packed [allQ | allK | allV],
    #    folding the 1/sqrt(Hd) softmax scale into the Q columns,
    #  * pad the output projection to a lane-dense multiple-of-128 column count,
    #  * cast MXU operands (x, weights) to bf16; bias and accumulation stay f32.
    Dpad = _round_up(Dout, 128)
    wqkv = jnp.concatenate([wq * scale, wk, wv], axis=1).astype(jnp.bfloat16)  # (Din, 3*Dout)
    wo_p = jnp.zeros((Dout, Dpad), jnp.bfloat16).at[:, :Dout].set(wo.astype(jnp.bfloat16))
    bo_p = jnp.zeros((1, Dpad), jnp.float32).at[:, :Dout].set(
        bo.astype(jnp.float32)[None, :])
    x2d = x.reshape(B * S, Din).astype(jnp.bfloat16)

    kernel = functools.partial(_attention_kernel, batch=B, seq=S, num_heads=H,
                               head_size=Hd, out_size=Dout)

    # Whole problem fits one invocation: batch folded into the block, so the
    # per-step grid overhead is paid once and the output is one dense slab.
    # Weights use constant index maps (stay resident); default Buffered(2) kept.
    out2d = pl.pallas_call(
        kernel,
        out_shape=jax.ShapeDtypeStruct((B * S, Dpad), out_dtype),
        grid_spec=pltpu.PrefetchScalarGridSpec(
            num_scalar_prefetch=0,
            grid=(1,),
            in_specs=[
                pl.BlockSpec((B * S, Din), lambda i: (0, 0)),
                pl.BlockSpec((Din, 3 * Dout), lambda i: (0, 0)),
                pl.BlockSpec((Dout, Dpad), lambda i: (0, 0)),
                pl.BlockSpec((1, Dpad), lambda i: (0, 0)),
            ],
            out_specs=pl.BlockSpec((B * S, Dpad), lambda i: (0, 0)),
        ),
        compiler_params=pltpu.CompilerParams(
            dimension_semantics=("arbitrary",)),
    )(x2d, wqkv, wo_p, bo_p)

    return out2d[:, :Dout].reshape(B, S, Dout)


def attention_reference(x, wq, wk, wv, wo, bo, *, num_heads: int):
    """Pure-JAX f32 reference mirroring the PyTorch forward (eval mode)."""
    B, S, Din = x.shape
    Dout = wq.shape[1]
    Hd = Dout // num_heads
    q = (x @ wq).reshape(B, S, num_heads, Hd).transpose(0, 2, 1, 3)
    k = (x @ wk).reshape(B, S, num_heads, Hd).transpose(0, 2, 1, 3)
    v = (x @ wv).reshape(B, S, num_heads, Hd).transpose(0, 2, 1, 3)
    scores = jnp.einsum("bhqd,bhkd->bhqk", q, k)
    mask = jnp.triu(jnp.ones((S, S), dtype=bool), k=1)
    scores = jnp.where(mask, -jnp.inf, scores)
    attn = jax.nn.softmax(scores / math.sqrt(Hd), axis=-1)
    ctx = jnp.einsum("bhqk,bhkd->bhqd", attn, v).transpose(0, 2, 1, 3).reshape(B, S, Dout)
    return ctx @ wo + bo


if __name__ == "__main__":
    # Small shapes consistent with the module: (B, S, inSize) input.
    B, S = 2, 8
    in_size, out_size, num_heads = 32, 64, 4      # out_size % num_heads == 0

    key = jax.random.PRNGKey(0)
    kx, kq, kk, kv, ko, kb = jax.random.split(key, 6)

    x = jax.random.normal(kx, (B, S, in_size), dtype=jnp.float32)

    # Deterministic Linear-style init (uniform in +-1/sqrt(fan_in)), weights stored as (in, out).
    def init_w(k, fan_in, fan_out):
        lim = 1.0 / math.sqrt(fan_in)
        return jax.random.uniform(k, (fan_in, fan_out), jnp.float32, -lim, lim)

    wq = init_w(kq, in_size, out_size)
    wk = init_w(kk, in_size, out_size)
    wv = init_w(kv, in_size, out_size)
    wo = init_w(ko, out_size, out_size)
    bo = jax.random.uniform(kb, (out_size,), jnp.float32,
                            -1.0 / math.sqrt(out_size), 1.0 / math.sqrt(out_size))

    out = attention_forward(x, wq, wk, wv, wo, bo, num_heads=num_heads)
    out = jax.block_until_ready(out)

    ref = attention_reference(x, wq, wk, wv, wo, bo, num_heads=num_heads)
    assert out.shape == (B, S, out_size)
    # bf16 MXU operands + approx reciprocal => compare to f32 reference with a
    # correspondingly relaxed tolerance.
    assert jnp.allclose(out, ref, atol=2e-2, rtol=2e-2), "mismatch vs reference"

    print("KERNEL_OK")
</pallas_src>

<mosaic_0001>
module attributes {stable_mosaic.version = 11 : i64} {
  func.func @_attention_kernel(%arg0: i32, %arg1: memref<16x32xbf16, #tpu.memory_space<vmem>>, %arg2: memref<32x192xbf16, #tpu.memory_space<vmem>>, %arg3: memref<64x128xbf16, #tpu.memory_space<vmem>>, %arg4: memref<1x128xf32, #tpu.memory_space<vmem>>, %arg5: memref<16x128xf32, #tpu.memory_space<vmem>>) attributes {dimension_semantics = [#tpu.dimension_semantics<arbitrary>], iteration_bounds = array<i64: 1>, scalar_prefetch = 0 : i64, scratch_operands = 0 : i64, tpu.core_type = #tpu.core_type<tc>, window_params = [{pipeline_mode = #tpu.pipeline_mode<synchronous>, transform_indices = @transform_0, window_bounds = array<i64: 16, 32>}, {pipeline_mode = #tpu.pipeline_mode<synchronous>, transform_indices = @transform_1, window_bounds = array<i64: 32, 192>}, {pipeline_mode = #tpu.pipeline_mode<synchronous>, transform_indices = @transform_2, window_bounds = array<i64: 64, 128>}, {pipeline_mode = #tpu.pipeline_mode<synchronous>, transform_indices = @transform_3, window_bounds = array<i64: 1, 128>}, {pipeline_mode = #tpu.pipeline_mode<synchronous>, transform_indices = @transform_4, window_bounds = array<i64: 16, 128>}]} {
    %c0 = arith.constant 0 : index
    %c0_0 = arith.constant 0 : index
    %0 = vector.load %arg1[%c0, %c0_0] : memref<16x32xbf16, #tpu.memory_space<vmem>>, vector<16x32xbf16>
    %c0_1 = arith.constant 0 : index
    %c0_2 = arith.constant 0 : index
    %1 = vector.load %arg2[%c0_1, %c0_2] : memref<32x192xbf16, #tpu.memory_space<vmem>>, vector<32x192xbf16>
    %cst = arith.constant dense<0.000000e+00> : vector<16x192xf32>
    %2 = tpu.matmul %0, %1, %cst {dimension_numbers = #tpu.dot_dimension_numbers<[1], [0], [0], [1], [0, 0, 1, 1], [], []>} : vector<16x32xbf16>, vector<32x192xbf16>, vector<16x192xf32> -> vector<16x192xf32>
    %3 = vector.extract_strided_slice %2 {offsets = [0, 0], sizes = [16, 64], strides = [1, 1]} : vector<16x192xf32> to vector<16x64xf32>
    %4 = arith.truncf %3 : vector<16x64xf32> to vector<16x64xbf16>
    %5 = vector.extract_strided_slice %2 {offsets = [0, 64], sizes = [16, 64], strides = [1, 1]} : vector<16x192xf32> to vector<16x64xf32>
    %6 = arith.truncf %5 : vector<16x64xf32> to vector<16x64xbf16>
    %7 = vector.extract_strided_slice %2 {offsets = [0, 128], sizes = [16, 64], strides = [1, 1]} : vector<16x192xf32> to vector<16x64xf32>
    %8 = arith.truncf %7 : vector<16x64xf32> to vector<16x64xbf16>
    %9 = tpu.iota {dimensions = array<i32: 0>} : vector<8x8xi32>
    %10 = tpu.iota {dimensions = array<i32: 1>} : vector<8x8xi32>
    %11 = arith.cmpi sgt, %10, %9 : vector<8x8xi32>
    %12 = vector.extract_strided_slice %4 {offsets = [0, 0], sizes = [8, 16], strides = [1, 1]} : vector<16x64xbf16> to vector<8x16xbf16>
    %13 = vector.extract_strided_slice %6 {offsets = [0, 0], sizes = [8, 16], strides = [1, 1]} : vector<16x64xbf16> to vector<8x16xbf16>
    %14 = vector.extract_strided_slice %8 {offsets = [0, 0], sizes = [8, 16], strides = [1, 1]} : vector<16x64xbf16> to vector<8x16xbf16>
    %cst_3 = arith.constant dense<0.000000e+00> : vector<8x8xf32>
    %15 = tpu.matmul %12, %13, %cst_3 {dimension_numbers = #tpu.dot_dimension_numbers<[1], [1], [0], [0], [0, 0, 1, 0], [], []>} : vector<8x16xbf16>, vector<8x16xbf16>, vector<8x8xf32> -> vector<8x8xf32>
    %cst_4 = arith.constant -1.000000e+30 : f32
    %16 = vector.broadcast %cst_4 : f32 to vector<8x8xf32>
    %17 = arith.select %11, %16, %15 : vector<8x8xi1>, vector<8x8xf32>
    %cst_5 = arith.constant dense<0xFF800000> : vector<8xf32>
    %18 = vector.multi_reduction <maximumf>, %17, %cst_5 [1] : vector<8x8xf32> to vector<8xf32>
    %19 = vector.shape_cast %18 : vector<8xf32> to vector<8x1xf32>
    %20 = vector.broadcast %19 : vector<8x1xf32> to vector<8x8xf32>
    %21 = arith.subf %17, %20 : vector<8x8xf32>
    %22 = math.exp %21 : vector<8x8xf32>
    %cst_6 = arith.constant dense<0.000000e+00> : vector<8xf32>
    %23 = vector.multi_reduction <add>, %22, %cst_6 [1] : vector<8x8xf32> to vector<8xf32>
    %24 = vector.shape_cast %23 : vector<8xf32> to vector<8x1xf32>
    %25 = tpu.reciprocal %24 {approx = true} : vector<8x1xf32> -> vector<8x1xf32>
    %26 = vector.broadcast %25 : vector<8x1xf32> to vector<8x8xf32>
    %27 = arith.mulf %22, %26 : vector<8x8xf32>
    %28 = arith.truncf %27 : vector<8x8xf32> to vector<8x8xbf16>
    %cst_7 = arith.constant dense<0.000000e+00> : vector<8x16xf32>
    %29 = tpu.matmul %28, %14, %cst_7 {dimension_numbers = #tpu.dot_dimension_numbers<[1], [0], [0], [1], [0, 0, 1, 1], [], []>} : vector<8x8xbf16>, vector<8x16xbf16>, vector<8x16xf32> -> vector<8x16xf32>
    %30 = vector.extract_strided_slice %4 {offsets = [0, 16], sizes = [8, 16], strides = [1, 1]} : vector<16x64xbf16> to vector<8x16xbf16>
    %31 = vector.extract_strided_slice %6 {offsets = [0, 16], sizes = [8, 16], strides = [1, 1]} : vector<16x64xbf16> to vector<8x16xbf16>
    %32 = vector.extract_strided_slice %8 {offsets = [0, 16], sizes = [8, 16], strides = [1, 1]} : vector<16x64xbf16> to vector<8x16xbf16>
    %cst_8 = arith.constant dense<0.000000e+00> : vector<8x8xf32>
    %33 = tpu.matmul %30, %31, %cst_8 {dimension_numbers = #tpu.dot_dimension_numbers<[1], [1], [0], [0], [0, 0, 1, 0], [], []>} : vector<8x16xbf16>, vector<8x16xbf16>, vector<8x8xf32> -> vector<8x8xf32>
    %cst_9 = arith.constant -1.000000e+30 : f32
    %34 = vector.broadcast %cst_9 : f32 to vector<8x8xf32>
    %35 = arith.select %11, %34, %33 : vector<8x8xi1>, vector<8x8xf32>
    %cst_10 = arith.constant dense<0xFF800000> : vector<8xf32>
    %36 = vector.multi_reduction <maximumf>, %35, %cst_10 [1] : vector<8x8xf32> to vector<8xf32>
    %37 = vector.shape_cast %36 : vector<8xf32> to vector<8x1xf32>
    %38 = vector.broadcast %37 : vector<8x1xf32> to vector<8x8xf32>
    %39 = arith.subf %35, %38 : vector<8x8xf32>
    %40 = math.exp %39 : vector<8x8xf32>
    %cst_11 = arith.constant dense<0.000000e+00> : vector<8xf32>
    %41 = vector.multi_reduction <add>, %40, %cst_11 [1] : vector<8x8xf32> to vector<8xf32>
    %42 = vector.shape_cast %41 : vector<8xf32> to vector<8x1xf32>
    %43 = tpu.reciprocal %42 {approx = true} : vector<8x1xf32> -> vector<8x1xf32>
    %44 = vector.broadcast %43 : vector<8x1xf32> to vector<8x8xf32>
    %45 = arith.mulf %40, %44 : vector<8x8xf32>
    %46 = arith.truncf %45 : vector<8x8xf32> to vector<8x8xbf16>
    %cst_12 = arith.constant dense<0.000000e+00> : vector<8x16xf32>
    %47 = tpu.matmul %46, %32, %cst_12 {dimension_numbers = #tpu.dot_dimension_numbers<[1], [0], [0], [1], [0, 0, 1, 1], [], []>} : vector<8x8xbf16>, vector<8x16xbf16>, vector<8x16xf32> -> vector<8x16xf32>
    %48 = vector.extract_strided_slice %4 {offsets = [0, 32], sizes = [8, 16], strides = [1, 1]} : vector<16x64xbf16> to vector<8x16xbf16>
    %49 = vector.extract_strided_slice %6 {offsets = [0, 32], sizes = [8, 16], strides = [1, 1]} : vector<16x64xbf16> to vector<8x16xbf16>
    %50 = vector.extract_strided_slice %8 {offsets = [0, 32], sizes = [8, 16], strides = [1, 1]} : vector<16x64xbf16> to vector<8x16xbf16>
    %cst_13 = arith.constant dense<0.000000e+00> : vector<8x8xf32>
    %51 = tpu.matmul %48, %49, %cst_13 {dimension_numbers = #tpu.dot_dimension_numbers<[1], [1], [0], [0], [0, 0, 1, 0], [], []>} : vector<8x16xbf16>, vector<8x16xbf16>, vector<8x8xf32> -> vector<8x8xf32>
    %cst_14 = arith.constant -1.000000e+30 : f32
    %52 = vector.broadcast %cst_14 : f32 to vector<8x8xf32>
    %53 = arith.select %11, %52, %51 : vector<8x8xi1>, vector<8x8xf32>
    %cst_15 = arith.constant dense<0xFF800000> : vector<8xf32>
    %54 = vector.multi_reduction <maximumf>, %53, %cst_15 [1] : vector<8x8xf32> to vector<8xf32>
    %55 = vector.shape_cast %54 : vector<8xf32> to vector<8x1xf32>
    %56 = vector.broadcast %55 : vector<8x1xf32> to vector<8x8xf32>
    %57 = arith.subf %53, %56 : vector<8x8xf32>
    %58 = math.exp %57 : vector<8x8xf32>
    %cst_16 = arith.constant dense<0.000000e+00> : vector<8xf32>
    %59 = vector.multi_reduction <add>, %58, %cst_16 [1] : vector<8x8xf32> to vector<8xf32>
    %60 = vector.shape_cast %59 : vector<8xf32> to vector<8x1xf32>
    %61 = tpu.reciprocal %60 {approx = true} : vector<8x1xf32> -> vector<8x1xf32>
    %62 = vector.broadcast %61 : vector<8x1xf32> to vector<8x8xf32>
    %63 = arith.mulf %58, %62 : vector<8x8xf32>
    %64 = arith.truncf %63 : vector<8x8xf32> to vector<8x8xbf16>
    %cst_17 = arith.constant dense<0.000000e+00> : vector<8x16xf32>
    %65 = tpu.matmul %64, %50, %cst_17 {dimension_numbers = #tpu.dot_dimension_numbers<[1], [0], [0], [1], [0, 0, 1, 1], [], []>} : vector<8x8xbf16>, vector<8x16xbf16>, vector<8x16xf32> -> vector<8x16xf32>
    %66 = vector.extract_strided_slice %4 {offsets = [0, 48], sizes = [8, 16], strides = [1, 1]} : vector<16x64xbf16> to vector<8x16xbf16>
    %67 = vector.extract_strided_slice %6 {offsets = [0, 48], sizes = [8, 16], strides = [1, 1]} : vector<16x64xbf16> to vector<8x16xbf16>
    %68 = vector.extract_strided_slice %8 {offsets = [0, 48], sizes = [8, 16], strides = [1, 1]} : vector<16x64xbf16> to vector<8x16xbf16>
    %cst_18 = arith.constant dense<0.000000e+00> : vector<8x8xf32>
    %69 = tpu.matmul %66, %67, %cst_18 {dimension_numbers = #tpu.dot_dimension_numbers<[1], [1], [0], [0], [0, 0, 1, 0], [], []>} : vector<8x16xbf16>, vector<8x16xbf16>, vector<8x8xf32> -> vector<8x8xf32>
    %cst_19 = arith.constant -1.000000e+30 : f32
    %70 = vector.broadcast %cst_19 : f32 to vector<8x8xf32>
    %71 = arith.select %11, %70, %69 : vector<8x8xi1>, vector<8x8xf32>
    %cst_20 = arith.constant dense<0xFF800000> : vector<8xf32>
    %72 = vector.multi_reduction <maximumf>, %71, %cst_20 [1] : vector<8x8xf32> to vector<8xf32>
    %73 = vector.shape_cast %72 : vector<8xf32> to vector<8x1xf32>
    %74 = vector.broadcast %73 : vector<8x1xf32> to vector<8x8xf32>
    %75 = arith.subf %71, %74 : vector<8x8xf32>
    %76 = math.exp %75 : vector<8x8xf32>
    %cst_21 = arith.constant dense<0.000000e+00> : vector<8xf32>
    %77 = vector.multi_reduction <add>, %76, %cst_21 [1] : vector<8x8xf32> to vector<8xf32>
    %78 = vector.shape_cast %77 : vector<8xf32> to vector<8x1xf32>
    %79 = tpu.reciprocal %78 {approx = true} : vector<8x1xf32> -> vector<8x1xf32>
    %80 = vector.broadcast %79 : vector<8x1xf32> to vector<8x8xf32>
    %81 = arith.mulf %76, %80 : vector<8x8xf32>
    %82 = arith.truncf %81 : vector<8x8xf32> to vector<8x8xbf16>
    %cst_22 = arith.constant dense<0.000000e+00> : vector<8x16xf32>
    %83 = tpu.matmul %82, %68, %cst_22 {dimension_numbers = #tpu.dot_dimension_numbers<[1], [0], [0], [1], [0, 0, 1, 1], [], []>} : vector<8x8xbf16>, vector<8x16xbf16>, vector<8x16xf32> -> vector<8x16xf32>
    %84 = tpu.concatenate %29, %47, %65, %83 in 1 : vector<8x16xf32>, vector<8x16xf32>, vector<8x16xf32>, vector<8x16xf32> -> vector<8x64xf32>
    %85 = vector.extract_strided_slice %4 {offsets = [8, 0], sizes = [8, 16], strides = [1, 1]} : vector<16x64xbf16> to vector<8x16xbf16>
    %86 = vector.extract_strided_slice %6 {offsets = [8, 0], sizes = [8, 16], strides = [1, 1]} : vector<16x64xbf16> to vector<8x16xbf16>
    %87 = vector.extract_strided_slice %8 {offsets = [8, 0], sizes = [8, 16], strides = [1, 1]} : vector<16x64xbf16> to vector<8x16xbf16>
    %cst_23 = arith.constant dense<0.000000e+00> : vector<8x8xf32>
    %88 = tpu.matmul %85, %86, %cst_23 {dimension_numbers = #tpu.dot_dimension_numbers<[1], [1], [0], [0], [0, 0, 1, 0], [], []>} : vector<8x16xbf16>, vector<8x16xbf16>, vector<8x8xf32> -> vector<8x8xf32>
    %cst_24 = arith.constant -1.000000e+30 : f32
    %89 = vector.broadcast %cst_24 : f32 to vector<8x8xf32>
    %90 = arith.select %11, %89, %88 : vector<8x8xi1>, vector<8x8xf32>
    %cst_25 = arith.constant dense<0xFF800000> : vector<8xf32>
    %91 = vector.multi_reduction <maximumf>, %90, %cst_25 [1] : vector<8x8xf32> to vector<8xf32>
    %92 = vector.shape_cast %91 : vector<8xf32> to vector<8x1xf32>
    %93 = vector.broadcast %92 : vector<8x1xf32> to vector<8x8xf32>
    %94 = arith.subf %90, %93 : vector<8x8xf32>
    %95 = math.exp %94 : vector<8x8xf32>
    %cst_26 = arith.constant dense<0.000000e+00> : vector<8xf32>
    %96 = vector.multi_reduction <add>, %95, %cst_26 [1] : vector<8x8xf32> to vector<8xf32>
    %97 = vector.shape_cast %96 : vector<8xf32> to vector<8x1xf32>
    %98 = tpu.reciprocal %97 {approx = true} : vector<8x1xf32> -> vector<8x1xf32>
    %99 = vector.broadcast %98 : vector<8x1xf32> to vector<8x8xf32>
    %100 = arith.mulf %95, %99 : vector<8x8xf32>
    %101 = arith.truncf %100 : vector<8x8xf32> to vector<8x8xbf16>
    %cst_27 = arith.constant dense<0.000000e+00> : vector<8x16xf32>
    %102 = tpu.matmul %101, %87, %cst_27 {dimension_numbers = #tpu.dot_dimension_numbers<[1], [0], [0], [1], [0, 0, 1, 1], [], []>} : vector<8x8xbf16>, vector<8x16xbf16>, vector<8x16xf32> -> vector<8x16xf32>
    %103 = vector.extract_strided_slice %4 {offsets = [8, 16], sizes = [8, 16], strides = [1, 1]} : vector<16x64xbf16> to vector<8x16xbf16>
    %104 = vector.extract_strided_slice %6 {offsets = [8, 16], sizes = [8, 16], strides = [1, 1]} : vector<16x64xbf16> to vector<8x16xbf16>
    %105 = vector.extract_strided_slice %8 {offsets = [8, 16], sizes = [8, 16], strides = [1, 1]} : vector<16x64xbf16> to vector<8x16xbf16>
    %cst_28 = arith.constant dense<0.000000e+00> : vector<8x8xf32>
    %106 = tpu.matmul %103, %104, %cst_28 {dimension_numbers = #tpu.dot_dimension_numbers<[1], [1], [0], [0], [0, 0, 1, 0], [], []>} : vector<8x16xbf16>, vector<8x16xbf16>, vector<8x8xf32> -> vector<8x8xf32>
    %cst_29 = arith.constant -1.000000e+30 : f32
    %107 = vector.broadcast %cst_29 : f32 to vector<8x8xf32>
    %108 = arith.select %11, %107, %106 : vector<8x8xi1>, vector<8x8xf32>
    %cst_30 = arith.constant dense<0xFF800000> : vector<8xf32>
    %109 = vector.multi_reduction <maximumf>, %108, %cst_30 [1] : vector<8x8xf32> to vector<8xf32>
    %110 = vector.shape_cast %109 : vector<8xf32> to vector<8x1xf32>
    %111 = vector.broadcast %110 : vector<8x1xf32> to vector<8x8xf32>
    %112 = arith.subf %108, %111 : vector<8x8xf32>
    %113 = math.exp %112 : vector<8x8xf32>
    %cst_31 = arith.constant dense<0.000000e+00> : vector<8xf32>
    %114 = vector.multi_reduction <add>, %113, %cst_31 [1] : vector<8x8xf32> to vector<8xf32>
    %115 = vector.shape_cast %114 : vector<8xf32> to vector<8x1xf32>
    %116 = tpu.reciprocal %115 {approx = true} : vector<8x1xf32> -> vector<8x1xf32>
    %117 = vector.broadcast %116 : vector<8x1xf32> to vector<8x8xf32>
    %118 = arith.mulf %113, %117 : vector<8x8xf32>
    %119 = arith.truncf %118 : vector<8x8xf32> to vector<8x8xbf16>
    %cst_32 = arith.constant dense<0.000000e+00> : vector<8x16xf32>
    %120 = tpu.matmul %119, %105, %cst_32 {dimension_numbers = #tpu.dot_dimension_numbers<[1], [0], [0], [1], [0, 0, 1, 1], [], []>} : vector<8x8xbf16>, vector<8x16xbf16>, vector<8x16xf32> -> vector<8x16xf32>
    %121 = vector.extract_strided_slice %4 {offsets = [8, 32], sizes = [8, 16], strides = [1, 1]} : vector<16x64xbf16> to vector<8x16xbf16>
    %122 = vector.extract_strided_slice %6 {offsets = [8, 32], sizes = [8, 16], strides = [1, 1]} : vector<16x64xbf16> to vector<8x16xbf16>
    %123 = vector.extract_strided_slice %8 {offsets = [8, 32], sizes = [8, 16], strides = [1, 1]} : vector<16x64xbf16> to vector<8x16xbf16>
    %cst_33 = arith.constant dense<0.000000e+00> : vector<8x8xf32>
    %124 = tpu.matmul %121, %122, %cst_33 {dimension_numbers = #tpu.dot_dimension_numbers<[1], [1], [0], [0], [0, 0, 1, 0], [], []>} : vector<8x16xbf16>, vector<8x16xbf16>, vector<8x8xf32> -> vector<8x8xf32>
    %cst_34 = arith.constant -1.000000e+30 : f32
    %125 = vector.broadcast %cst_34 : f32 to vector<8x8xf32>
    %126 = arith.select %11, %125, %124 : vector<8x8xi1>, vector<8x8xf32>
    %cst_35 = arith.constant dense<0xFF800000> : vector<8xf32>
    %127 = vector.multi_reduction <maximumf>, %126, %cst_35 [1] : vector<8x8xf32> to vector<8xf32>
    %128 = vector.shape_cast %127 : vector<8xf32> to vector<8x1xf32>
    %129 = vector.broadcast %128 : vector<8x1xf32> to vector<8x8xf32>
    %130 = arith.subf %126, %129 : vector<8x8xf32>
    %131 = math.exp %130 : vector<8x8xf32>
    %cst_36 = arith.constant dense<0.000000e+00> : vector<8xf32>
    %132 = vector.multi_reduction <add>, %131, %cst_36 [1] : vector<8x8xf32> to vector<8xf32>
    %133 = vector.shape_cast %132 : vector<8xf32> to vector<8x1xf32>
    %134 = tpu.reciprocal %133 {approx = true} : vector<8x1xf32> -> vector<8x1xf32>
    %135 = vector.broadcast %134 : vector<8x1xf32> to vector<8x8xf32>
    %136 = arith.mulf %131, %135 : vector<8x8xf32>
    %137 = arith.truncf %136 : vector<8x8xf32> to vector<8x8xbf16>
    %cst_37 = arith.constant dense<0.000000e+00> : vector<8x16xf32>
    %138 = tpu.matmul %137, %123, %cst_37 {dimension_numbers = #tpu.dot_dimension_numbers<[1], [0], [0], [1], [0, 0, 1, 1], [], []>} : vector<8x8xbf16>, vector<8x16xbf16>, vector<8x16xf32> -> vector<8x16xf32>
    %139 = vector.extract_strided_slice %4 {offsets = [8, 48], sizes = [8, 16], strides = [1, 1]} : vector<16x64xbf16> to vector<8x16xbf16>
    %140 = vector.extract_strided_slice %6 {offsets = [8, 48], sizes = [8, 16], strides = [1, 1]} : vector<16x64xbf16> to vector<8x16xbf16>
    %141 = vector.extract_strided_slice %8 {offsets = [8, 48], sizes = [8, 16], strides = [1, 1]} : vector<16x64xbf16> to vector<8x16xbf16>
    %cst_38 = arith.constant dense<0.000000e+00> : vector<8x8xf32>
    %142 = tpu.matmul %139, %140, %cst_38 {dimension_numbers = #tpu.dot_dimension_numbers<[1], [1], [0], [0], [0, 0, 1, 0], [], []>} : vector<8x16xbf16>, vector<8x16xbf16>, vector<8x8xf32> -> vector<8x8xf32>
    %cst_39 = arith.constant -1.000000e+30 : f32
    %143 = vector.broadcast %cst_39 : f32 to vector<8x8xf32>
    %144 = arith.select %11, %143, %142 : vector<8x8xi1>, vector<8x8xf32>
    %cst_40 = arith.constant dense<0xFF800000> : vector<8xf32>
    %145 = vector.multi_reduction <maximumf>, %144, %cst_40 [1] : vector<8x8xf32> to vector<8xf32>
    %146 = vector.shape_cast %145 : vector<8xf32> to vector<8x1xf32>
    %147 = vector.broadcast %146 : vector<8x1xf32> to vector<8x8xf32>
    %148 = arith.subf %144, %147 : vector<8x8xf32>
    %149 = math.exp %148 : vector<8x8xf32>
    %cst_41 = arith.constant dense<0.000000e+00> : vector<8xf32>
    %150 = vector.multi_reduction <add>, %149, %cst_41 [1] : vector<8x8xf32> to vector<8xf32>
    %151 = vector.shape_cast %150 : vector<8xf32> to vector<8x1xf32>
    %152 = tpu.reciprocal %151 {approx = true} : vector<8x1xf32> -> vector<8x1xf32>
    %153 = vector.broadcast %152 : vector<8x1xf32> to vector<8x8xf32>
    %154 = arith.mulf %149, %153 : vector<8x8xf32>
    %155 = arith.truncf %154 : vector<8x8xf32> to vector<8x8xbf16>
    %cst_42 = arith.constant dense<0.000000e+00> : vector<8x16xf32>
    %156 = tpu.matmul %155, %141, %cst_42 {dimension_numbers = #tpu.dot_dimension_numbers<[1], [0], [0], [1], [0, 0, 1, 1], [], []>} : vector<8x8xbf16>, vector<8x16xbf16>, vector<8x16xf32> -> vector<8x16xf32>
    %157 = tpu.concatenate %102, %120, %138, %156 in 1 : vector<8x16xf32>, vector<8x16xf32>, vector<8x16xf32>, vector<8x16xf32> -> vector<8x64xf32>
    %158 = tpu.concatenate %84, %157 in 0 : vector<8x64xf32>, vector<8x64xf32> -> vector<16x64xf32>
    %159 = arith.truncf %158 : vector<16x64xf32> to vector<16x64xbf16>
    %c0_43 = arith.constant 0 : index
    %c0_44 = arith.constant 0 : index
    %160 = vector.load %arg3[%c0_43, %c0_44] : memref<64x128xbf16, #tpu.memory_space<vmem>>, vector<64x128xbf16>
    %cst_45 = arith.constant dense<0.000000e+00> : vector<16x128xf32>
    %161 = tpu.matmul %159, %160, %cst_45 {dimension_numbers = #tpu.dot_dimension_numbers<[1], [0], [0], [1], [0, 0, 1, 1], [], []>} : vector<16x64xbf16>, vector<64x128xbf16>, vector<16x128xf32> -> vector<16x128xf32>
    %c0_46 = arith.constant 0 : index
    %c0_47 = arith.constant 0 : index
    %162 = vector.load %arg4[%c0_46, %c0_47] : memref<1x128xf32, #tpu.memory_space<vmem>>, vector<1x128xf32>
    %163 = vector.broadcast %162 : vector<1x128xf32> to vector<16x128xf32>
    %164 = arith.addf %161, %163 : vector<16x128xf32>
    %c0_48 = arith.constant 0 : index
    %c0_49 = arith.constant 0 : index
    %165 = vector.load %arg5[%c0_48, %c0_49] : memref<16x128xf32, #tpu.memory_space<vmem>>, vector<16x128xf32>
    tpu.vector_store %arg5[%c0_48, %c0_49], %164 {strides = array<i32>} : memref<16x128xf32, #tpu.memory_space<vmem>>, vector<16x128xf32>,
    return
  }
  func.func @transform_0(%arg0: i32) -> (i32, i32) {
    %c0_i32 = arith.constant 0 : i32
    %c0_i32_0 = arith.constant 0 : i32
    %c0_i32_1 = arith.constant 0 : i32
    return %c0_i32, %c0_i32_0 : i32, i32
  }
  func.func @transform_1(%arg0: i32) -> (i32, i32) {
    %c0_i32 = arith.constant 0 : i32
    %c0_i32_0 = arith.constant 0 : i32
    %c0_i32_1 = arith.constant 0 : i32
    return %c0_i32, %c0_i32_0 : i32, i32
  }
  func.func @transform_2(%arg0: i32) -> (i32, i32) {
    %c0_i32 = arith.constant 0 : i32
    %c0_i32_0 = arith.constant 0 : i32
    %c0_i32_1 = arith.constant 0 : i32
    return %c0_i32, %c0_i32_0 : i32, i32
  }
  func.func @transform_3(%arg0: i32) -> (i32, i32) {
    %c0_i32 = arith.constant 0 : i32
    %c0_i32_0 = arith.constant 0 : i32
    %c0_i32_1 = arith.constant 0 : i32
    return %c0_i32, %c0_i32_0 : i32, i32
  }
  func.func @transform_4(%arg0: i32) -> (i32, i32) {
    %c0_i32 = arith.constant 0 : i32
    %c0_i32_0 = arith.constant 0 : i32
    %c0_i32_1 = arith.constant 0 : i32
    return %c0_i32, %c0_i32_0 : i32, i32
  }
}

</mosaic_0001>

<bundles_post_ra>
// kernel: tpu_custom_call.1
= control target key start
LH: loop header
LB: loop body
LE: loop exit
PB: predicated region body
PF: predicated region fallthrough
CT: control target
= control target key end

     0   :  { %9 = vsyncpa [#allocation3], 0  ;;  %s1150_s0 = inlined_call_operand.hbm [shape: bf16[16,32], index: 0, kind: input, shape index: {}]   ;;  %s1151_s1 = inlined_call_operand.hbm [shape: bf16[32,192], index: 1, kind: input, shape index: {}]   ;;  %s1152_s2 = inlined_call_operand.hbm [shape: bf16[64,128], index: 2, kind: input, shape index: {}]   ;;  %s1153_s3 = inlined_call_operand.vmem [shape: f32[1,128], index: 3, kind: input, shape index: {}]   ;;  %s1154_s4 = inlined_call_operand.hbm [shape: f32[16,128], index: 4, kind: output, shape index: {}]  }
   0x1   :  { %10 = vsyncpa [#allocation6], 0  ;;  %s29_s17 = sshll.u32 %s1151_s1, 4  ;;  %s30_s17 = int_to_ptr.hbm [resolvable:$true] %s29_s17 }
   0x2   :  { %11 = vsyncpa [#allocation4], 0  ;;  %s937_s18 = smov [#allocation5]   ;;  %s16_s22 = sshll.u32 %s1150_s0, 4  ;;  %s17_s22 = int_to_ptr.hbm [resolvable:$true] %s16_s22 }
   0x3   :  { %s31_s19 = sshll.u32 %s937_s18, 4  ;;  %s938_s23 = smov 128   ;;  %s32_s19 = int_to_ptr.vmem [resolvable:$true] %s31_s19 }
   0x4   :  { %s939_s24 = smov 8   ;;  %s940_s25 = smov [#allocation2]  }
   0x5   :  { %37 = dma.hbm_to_vmem [thread:$0]  %s30_s17, 512, %s32_s19, [#allocation6], %s938_s23, %s938_s23, %s939_s24  }
   0x6   :  { %s18_s26 = sshll.u32 %s940_s25, 4  ;;  %s941_s1 = smov 64   ;;  %s19_s26 = int_to_ptr.vmem [resolvable:$true] %s18_s26 }
   0x7   :  { %s942_s27 = smov 4   ;;  %s42_s30 = sshll.u32 %s1152_s2, 4  ;;  %s43_s30 = int_to_ptr.hbm [resolvable:$true] %s42_s30 }
   0x8   :  { %24 = dma.hbm_to_vmem [thread:$0]  %s17_s22, 128, %s19_s26, [#allocation3], %s941_s1, %s941_s1, %s942_s27  }
   0x9   :  { %s943_s0 = smov [#allocation7]  }
   0xa   :  { %s44_s5 = sshll.u32 %s943_s0, 4  ;;  %s45_s5 = int_to_ptr.vmem [resolvable:$true] %s44_s5 }
   0xb   :  { %50 = dma.hbm_to_vmem [thread:$0]  %s43_s30, 512, %s45_s5, [#allocation6], %s941_s1, %s941_s1, %s942_s27  }
   0xc   :  { %931 = dma.done.wait [#allocation3], 128  }
   0xd   :  { %932 = vsyncadd [#allocation3], 4294967168 }
   0xe   :  { %933 = dma.done.wait [#allocation6], 1024  }
   0xf   :  { %934 = vsyncadd [#allocation6], 4294966272  ;;  %v723_v0 = vld [vmem:[#allocation5 + $0x10] sm:$0xf]  ;;  %v768_v1 = vld [vmem:[#allocation5 + $0x14] sm:$0xf0]  ;;  %v133_v30 = vlaneseq }
  0x10   :  { %v715_v2 = vld [vmem:[#allocation5] sm:$0xf]  ;;  %v724_v3 = vor.u32 %v768_v1, %v723_v0  ;;  %v766_v4 = vld [vmem:[#allocation5 + $0x4] sm:$0xf0]  ;;  %v764_v6 = vld [vmem:[#allocation2] sm:$0xff]  ;;  %vm97_vm0 = vcmask 261120  }
  0x11   :  { %v716_v5 = vor.u32 %v766_v4, %v715_v2  ;;  %s944_s2 = smov 112   ;;  %s945_s6 = smov 32   ;;  %v767_v15 = vld [vmem:[#allocation5 + $0x14] sm:$0xf]  ;;  %v725_v16 = vld [vmem:[#allocation5 + $0x18] sm:$0xf0] }
  0x12   :  { %107 = vmatpush.bf16.msra.mxu0 %v724_v3  ;;  %s946_s7 = smov 16   ;;  %s947_s8 = smov 96   ;;  %v728_v17 = vor.u32 %v767_v15, %v725_v16  ;;  %v765_v18 = vld [vmem:[#allocation5 + $0x4] sm:$0xf]  ;;  %v717_v19 = vld [vmem:[#allocation5 + $0x8] sm:$0xf0] }
  0x13   :  { %s948_s9 = smov 80   ;;  %s949_s10 = smov 48   ;;  %v720_v20 = vor.u32 %v765_v18, %v717_v19  ;;  %vm143_vm1 = vcmask 130048   ;;  %v134_v31 = vshrl.u32 %v133_v30, 7  ;;  %v136_v32 = vand.u32 127, %v133_v30 }
  0x14   :  { %121 = vmatpush.bf16.msra.mxu1 %v728_v17  ;;  %vm164_vm3 = vcmask 64512   ;;  %vm180_vm4 = vcmask 1043456   ;;  %vm385_vm5 = vcmask 392192   ;;  %vm669_vm6 = vcmask 523264   ;;  %s950_s13 = smov [#allocation8]   ;;  %s695_s17 = sshll.u32 %s1154_s4, 4  ;;  %s696_s17 = int_to_ptr.hbm [resolvable:$true] %s695_s17 }
  0x15   :  { %vm1027_vm2 = vcmp.gt.s32.totalorder %v136_v32, %v134_v31  ;;  %s693_s14 = sshll.u32 %s950_s13, 4  ;;  %s694_s14 = int_to_ptr.vmem [resolvable:$true] %s693_s14 }
  0x16   :  { %108 = vmatpush.bf16.msra.mxu0 %v716_v5 }
  0x18   :  { %122 = vmatpush.bf16.msra.mxu1 %v720_v20 }
  0x19   :  { %729 = vmatmul.msk.bf16.vlgmr.msra.gmra.mxu0 %vm97_vm0, %v764_v6 }
  0x1b   :  { %730 = vmatmul.msk.bf16.vlgmr.msra.gmra.mxu1 %vm97_vm0, %v764_v6 }
  0x96   :  { %v110_v7 = vpop.f32.mrf.mxu0 }
  0x97   :  { %v129_v8 = vpack.c.bf16 %v110_v7, %v110_v7 }
  0x98   :  { %v124_v28 = vpop.f32.mrf.mxu1 }
  0x99   :  { %v139_v9 = vunpack.c.l.b16 %v129_v8  ;;  %v1052_v56 = vpack.c.bf16 %v124_v28, %v124_v28 }
  0x9b   :  { %v993_v10 = vpack.c.b16 %v139_v9, %v139_v9  ;;  %v182_v57 = vsel %vm180_vm4, %v1052_v56, 0  ;;  %v234_v32 = vunpack.c.l.b16 %v1052_v56 }
  0x9c   :  { %191 = vmatpush.bf16.msra.mxu3 %v182_v57 }
  0x9d   :  { %197 = vrot.lane.b32.xlu2 %v993_v10, %s944_s2  ;;  %141 = vrot.lane.b32.xlu0 %v993_v10, %s941_s1 }
  0x9e   :  { %v112_v11 = vpop.f32.mrf.mxu0 }
  0x9f   :  { %v1005_v12 = vpack.c.bf16 %v112_v11, %v112_v11 }
  0xa0   :  { %v1025_v29 = vpop.f32.mrf.mxu1 }
  0xa1   :  { %v388_v13 = vunpack.c.l.b16 %v1005_v12 }
  0xa3   :  { %v1010_v14 = vpack.c.b16 %v388_v13, %v388_v13 }
  0xa5   :  { %259 = vrot.lane.b32.xlu2 %v993_v10, %s945_s6 }
  0xad   :  { %316 = vrot.lane.b32.xlu2 %v993_v10, %s946_s7 }
  0xb5   :  { %257 = vrot.lane.b32.xlu2 %v993_v10, %s947_s8 }
  0xbd   :  { %314 = vrot.lane.b32.xlu2 %v993_v10, %s948_s9 }
  0xc5   :  { %445 = vrot.lane.b32.xlu2 %v1010_v14, %s949_s10 }
  0xcd   :  { %505 = vrot.lane.b32.xlu2 %v1010_v14, %s945_s6 }
  0xd5   :  { %560 = vrot.lane.b32.xlu2 %v1010_v14, %s948_s9 }
  0xf7   :  { %v1019_v21 = vpop.permute.xlu2 %197 }
  0xff   :  { %v260_v22 = vpop.permute.xlu2 %259 }
 0x100   :  { %v265_v23 = vsel %vm143_vm1, %v260_v22, 0 }
 0x101   :  { %274 = vmatpush.bf16.xpose.msrb.mxu1 %v265_v23 }
 0x107   :  { %v317_v24 = vpop.permute.xlu2 %316 }
 0x108   :  { %v322_v0 = vsel %vm143_vm1, %v317_v24, 0 }
 0x10f   :  { %v258_v25 = vpop.permute.xlu2 %257  ;;  %v142_v26 = vpop.permute.xlu0 %141 }
 0x110   :  { %735 = vmatmul.msk.bf16.vlgmr.msrb.gmra.mxu1 %vm143_vm1, %v258_v25  ;;  %v148_v27 = vsel %vm143_vm1, %v142_v26, 0 }
 0x111   :  { %157 = vmatpush.bf16.xpose.msra.mxu2 %v148_v27 }
 0x117   :  { %v315_v42 = vpop.permute.xlu2 %314 }
 0x118   :  { %731 = vmatmul.msk.bf16.vlgmr.msra.gmra.mxu2 %vm143_vm1, %v129_v8 }
 0x11f   :  { %v446_v43 = vpop.permute.xlu2 %445 }
 0x120   :  { %v451_v2 = vsel %vm143_vm1, %v446_v43, 0 }
 0x127   :  { %v506_v44 = vpop.permute.xlu2 %505 }
 0x128   :  { %v511_v4 = vsel %vm143_vm1, %v506_v44, 0 }
 0x12f   :  { %v561_v45 = vpop.permute.xlu2 %560 }
 0x18d   :  { %v276_v34 = vpop.f32.mrf.mxu1 }
 0x18e   :  { %v280_v35 = vsel %vm1027_vm2, -1e+30, %v276_v34 }
 0x18f   :  { %v281_v36 = vsel %vm164_vm3, %v280_v35, -inf }
 0x190   :  { %282 = vmax.xlane.f32.xlu2 %v281_v36 }
 0x195   :  { %v278_v37 = vpop.f32.mrf.mxu1 }
 0x196   :  { %v235_v37 = vpack.c.b16 %v234_v32, %v234_v32 }
 0x19b   :  { %v159_v38 = vpop.f32.mrf.mxu2 }
 0x19c   :  { %v163_v39 = vsel %vm1027_vm2, -1e+30, %v159_v38 }
 0x19d   :  { %v165_v40 = vsel %vm164_vm3, %v163_v39, -inf }
 0x19e   :  { %166 = vmax.xlane.f32.xlu0 %v165_v40 }
 0x1a3   :  { %v161_v41 = vpop.f32.mrf.mxu2 }
 0x1b2   :  { %503 = vrot.lane.b32.xlu0 %v1010_v14, %s947_s8 }
 0x203   :  { %v283_v46 = vpop.xlane.xlu2 %282 }
 0x204   :  { %v284_v47 = vsub.f32 %v280_v35, %v283_v46 }
 0x206   :  { %v285_v48 = vmul.f32 1.442695, %v284_v47 }
 0x208   :  { %803 = vpow2.f32 %v285_v48 }
 0x20e   :  { %v1039_v49 = vpop.eup %803 }
 0x20f   :  { %v287_v50 = vsel %vm164_vm3, %v1039_v49, 0.0 }
 0x210   :  { %288 = vadd.xlane.f32.xlu0 %v287_v50 }
 0x211   :  { %v167_v51 = vpop.xlane.xlu0 %166 }
 0x212   :  { %v168_v52 = vsub.f32 %v163_v39, %v167_v51 }
 0x214   :  { %v169_v53 = vmul.f32 1.442695, %v168_v52 }
 0x216   :  { %805 = vpow2.f32 %v169_v53 }
 0x21c   :  { %v806_v54 = vpop.eup %805 }
 0x21d   :  { %v171_v55 = vsel %vm164_vm3, %v806_v54, 0.0 }
 0x21e   :  { %172 = vadd.xlane.f32.xlu1 %v171_v55 }
 0x224   :  { %v504_v8 = vpop.permute.xlu0 %503 }
 0x237   :  { %199 = vrot.lane.b32.xlu1 %v993_v10, %s949_s10 }
 0x23f   :  { %390 = vrot.lane.b32.xlu1 %v1010_v14, %s941_s1 }
 0x247   :  { %443 = vrot.lane.b32.xlu1 %v1010_v14, %s944_s2 }
 0x24f   :  { %562 = vrot.lane.b32.xlu1 %v1010_v14, %s946_s7 }
 0x283   :  { %v289_v43 = vpop.xlane.xlu0 %288 }
 0x291   :  { %v173_v58 = vpop.xlane.xlu1 %172 }
 0x292   :  { %807 = vrcp.f32 %v173_v58 }
 0x298   :  { %v808_v59 = vpop.eup %807 }
 0x299   :  { %v175_v60 = vmul.f32 %v808_v59, %v806_v54 }
 0x29b   :  { %v176_v61 = vpack.c.bf16 %v175_v60, %v175_v60 }
 0x29d   :  { %732 = vmatmul.msk.bf16.vlgmr.msra.gmra.mxu3 %vm164_vm3, %v176_v61 }
 0x2a9   :  { %v200_v62 = vpop.permute.xlu1 %199 }
 0x2aa   :  { %v205_v63 = vsel %vm143_vm1, %v200_v62, 0 }
 0x2ab   :  { %214 = vmatpush.bf16.xpose.msrb.mxu3 %v205_v63 }
 0x2b1   :  { %v391_v1 = vpop.permute.xlu1 %390 }
 0x2b2   :  { %v396_v3 = vsel %vm143_vm1, %v391_v1, 0  ;;  %733 = vmatmul.msk.bf16.vlgmr.msrb.gmra.mxu3 %vm143_vm1, %v1019_v21 }
 0x2b3   :  { %331 = vmatpush.bf16.xpose.msra.mxu3 %v322_v0  ;;  %405 = vmatpush.bf16.xpose.msra.mxu1 %v396_v3 }
 0x2b9   :  { %v444_v5 = vpop.permute.xlu1 %443 }
 0x2ba   :  { %739 = vmatmul.msk.bf16.vlgmr.msra.gmra.mxu1 %vm143_vm1, %v1005_v12 }
 0x2bb   :  { %460 = vmatpush.bf16.xpose.msrb.mxu3 %v451_v2  ;;  %520 = vmatpush.bf16.xpose.msrb.mxu1 %v511_v4  ;;  %v132_v4 = vpack.c.bf16 %v1025_v29, %v1025_v29 }
 0x2c1   :  { %v563_v6 = vpop.permute.xlu1 %562 }
 0x2c2   :  { %v568_v7 = vsel %vm143_vm1, %v563_v6, 0  ;;  %737 = vmatmul.msk.bf16.vlgmr.msra.gmra.mxu3 %vm143_vm1, %v315_v42  ;;  %v480_v6 = vunpack.c.l.b16 %v132_v4 }
 0x2c3   :  { %577 = vmatpush.bf16.xpose.msra.mxu3 %v568_v7 }
 0x2ca   :  { %743 = vmatmul.msk.bf16.vlgmr.msrb.gmra.mxu1 %vm143_vm1, %v504_v8 }
 0x2d2   :  { %741 = vmatmul.msk.bf16.vlgmr.msrb.gmra.mxu3 %vm143_vm1, %v444_v5 }
 0x2e2   :  { %745 = vmatmul.msk.bf16.vlgmr.msra.gmra.mxu3 %vm143_vm1, %v561_v45 }
 0x320   :  { %v1071_v9 = vpop.f32.mrf.mxu3 }
 0x328   :  { %v195_v10 = vpop.f32.mrf.mxu3 }
 0x329   :  { %v481_v10 = vpack.c.b16 %v480_v6, %v480_v6  ;;  %v769_v6 = vld [vmem:[#allocation7] sm:$0xff] }
 0x335   :  { %v216_v11 = vpop.f32.mrf.mxu3 }
 0x336   :  { %v220_v24 = vsel %vm1027_vm2, -1e+30, %v216_v11 }
 0x337   :  { %v407_v13 = vpop.f32.mrf.mxu1  ;;  %v221_v26 = vsel %vm164_vm3, %v220_v24, -inf }
 0x338   :  { %v411_v12 = vsel %vm1027_vm2, -1e+30, %v407_v13 }
 0x339   :  { %v412_v14 = vsel %vm164_vm3, %v411_v12, -inf }
 0x33a   :  { %413 = vmax.xlane.f32.xlu1 %v412_v14  ;;  %v428_v14 = vsel %vm180_vm4, %v132_v4, 0  ;;  %v771_v4 = vld [vmem:[#allocation7 + $0x10] sm:$0xff] }
 0x33d   :  { %v218_v15 = vpop.f32.mrf.mxu3 }
 0x33f   :  { %v409_v16 = vpop.f32.mrf.mxu1 }
 0x345   :  { %v333_v17 = vpop.f32.mrf.mxu3 }
 0x346   :  { %v337_v18 = vsel %vm1027_vm2, -1e+30, %v333_v17 }
 0x347   :  { %v522_v19 = vpop.f32.mrf.mxu1  ;;  %v338_v20 = vsel %vm164_vm3, %v337_v18, -inf }
 0x348   :  { %v1081_v21 = vsel %vm1027_vm2, -1e+30, %v522_v19  ;;  %339 = vmax.xlane.f32.xlu0 %v338_v20 }
 0x349   :  { %v527_v22 = vsel %vm164_vm3, %v1081_v21, -inf }
 0x34a   :  { %528 = vmax.xlane.f32.xlu1 %v527_v22 }
 0x34d   :  { %v335_v23 = vpop.f32.mrf.mxu3 }
 0x34f   :  { %v524_v25 = vpop.f32.mrf.mxu1 }
 0x352   :  { %222 = vmax.xlane.f32.xlu1 %v221_v26 }
 0x355   :  { %v462_v27 = vpop.f32.mrf.mxu3 }
 0x356   :  { %v466_v28 = vsel %vm1027_vm2, -1e+30, %v462_v27 }
 0x357   :  { %v467_v30 = vsel %vm164_vm3, %v466_v28, -inf }
 0x358   :  { %468 = vmax.xlane.f32.xlu2 %v467_v30 }
 0x35d   :  { %v464_v31 = vpop.f32.mrf.mxu3 }
 0x365   :  { %v579_v34 = vpop.f32.mrf.mxu3 }
 0x366   :  { %v583_v35 = vsel %vm1027_vm2, -1e+30, %v579_v34 }
 0x367   :  { %v584_v36 = vsel %vm164_vm3, %v583_v35, -inf }
 0x368   :  { %585 = vmax.xlane.f32.xlu0 %v584_v36 }
 0x36b   :  { %236 = vrot.lane.b32.xlu1 %v235_v37, %s944_s2 }
 0x36d   :  { %v581_v38 = vpop.f32.mrf.mxu3 }
 0x370   :  { %350 = vrot.lane.b32.xlu2 %v235_v37, %s948_s9 }
 0x37c   :  { %293 = vrot.lane.b32.xlu0 %v235_v37, %s947_s8 }
 0x3ad   :  { %v414_v39 = vpop.xlane.xlu1 %413 }
 0x3ae   :  { %v415_v40 = vsub.f32 %v411_v12, %v414_v39 }
 0x3b0   :  { %v416_v41 = vmul.f32 1.442695, %v415_v40 }
 0x3b2   :  { %809 = vpow2.f32 %v416_v41 }
 0x3b8   :  { %v1098_v42 = vpop.eup %809 }
 0x3b9   :  { %v418_v33 = vsel %vm164_vm3, %v1098_v42, 0.0 }
 0x3ba   :  { %419 = vadd.xlane.f32.xlu1 %v418_v33 }
 0x3bb   :  { %v340_v45 = vpop.xlane.xlu0 %339 }
 0x3bc   :  { %v341_v48 = vsub.f32 %v337_v18, %v340_v45 }
 0x3bd   :  { %v529_v44 = vpop.xlane.xlu1 %528 }
 0x3be   :  { %v342_v51 = vmul.f32 1.442695, %v341_v48  ;;  %v530_v15 = vsub.f32 %v1081_v21, %v529_v44 }
 0x3c0   :  { %v531_v16 = vmul.f32 1.442695, %v530_v15 }
 0x3c5   :  { %v223_v46 = vpop.xlane.xlu1 %222 }
 0x3c6   :  { %v224_v47 = vsub.f32 %v220_v24, %v223_v46 }
 0x3c8   :  { %v225_v50 = vmul.f32 1.442695, %v224_v47 }
 0x3ca   :  { %811 = vpow2.f32 %v225_v50 }
 0x3cb   :  { %v469_v52 = vpop.xlane.xlu2 %468  ;;  %813 = vpow2.f32 %v342_v51 }
 0x3cc   :  { %v470_v53 = vsub.f32 %v466_v28, %v469_v52 }
 0x3ce   :  { %v471_v54 = vmul.f32 1.442695, %v470_v53 }
 0x3d0   :  { %v812_v55 = vpop.eup %811  ;;  %815 = vpow2.f32 %v471_v54 }
 0x3d1   :  { %v227_v56 = vsel %vm164_vm3, %v812_v55, 0.0  ;;  %v814_v57 = vpop.eup %813 }
 0x3d2   :  { %228 = vadd.xlane.f32.xlu2 %v227_v56  ;;  %v344_v60 = vsel %vm164_vm3, %v814_v57, 0.0 }
 0x3d3   :  { %v351_v62 = vpop.permute.xlu2 %350 }
 0x3d4   :  { %v356_v3 = vsel %vm180_vm4, %v351_v62, 0 }
 0x3d6   :  { %v1103_v58 = vpop.eup %815 }
 0x3d7   :  { %v473_v59 = vsel %vm164_vm3, %v1103_v58, 0.0 }
 0x3d8   :  { %474 = vadd.xlane.f32.xlu0 %v473_v59 }
 0x3da   :  { %345 = vadd.xlane.f32.xlu2 %v344_v60 }
 0x3db   :  { %v586_v61 = vpop.xlane.xlu0 %585 }
 0x3dc   :  { %v587_v63 = vsub.f32 %v583_v35, %v586_v61 }
 0x3dd   :  { %v237_v0 = vpop.permute.xlu1 %236 }
 0x3de   :  { %v588_v1 = vmul.f32 1.442695, %v587_v63  ;;  %v242_v2 = vsel %vm180_vm4, %v237_v0, 0 }
 0x3df   :  { %251 = vmatpush.bf16.msrb.mxu0 %v242_v2 }
 0x3e0   :  { %817 = vpow2.f32 %v588_v1 }
 0x3e1   :  { %819 = vrcp.f32 %v289_v43 }
 0x3e2   :  { %821 = vpow2.f32 %v531_v16 }
 0x3e3   :  { %365 = vmatpush.bf16.msra.mxu0 %v356_v3  ;;  %v772_v3 = vld [vmem:[#allocation7 + $0x18] sm:$0xff] }
 0x3e4   :  { %677 = vmatpush.bf16.msra.mxu1 %v772_v3 }
 0x3e6   :  { %v818_v5 = vpop.eup %817 }
 0x3e7   :  { %v590_v7 = vsel %vm164_vm3, %v818_v5, 0.0  ;;  %v820_v8 = vpop.eup %819 }
 0x3e8   :  { %591 = vadd.xlane.f32.xlu1 %v590_v7  ;;  %v291_v11 = vmul.f32 %v820_v8, %v1039_v49  ;;  %v822_v17 = vpop.eup %821  ;;  %678 = vmatpush.bf16.msra.mxu1 %v771_v4 }
 0x3e9   :  { %v533_v49 = vsel %vm164_vm3, %v822_v17, 0.0 }
 0x3ea   :  { %v292_v29 = vpack.c.bf16 %v291_v11, %v291_v11 }
 0x3ec   :  { %539 = vrot.lane.b32.xlu0 %v481_v10, %s947_s8 }
 0x3ee   :  { %v294_v13 = vpop.permute.xlu0 %293 }
 0x3ef   :  { %v299_v12 = vsel %vm180_vm4, %v294_v13, 0 }
 0x3f0   :  { %308 = vmatpush.bf16.msrb.mxu2 %v299_v12 }
 0x3f2   :  { %482 = vrot.lane.b32.xlu2 %v481_v10, %s944_s2 }
 0x3f3   :  { %736 = vmatmul.msk.bf16.vlgmr.msrb.gmra.mxu2 %vm164_vm3, %v292_v29 }
 0x3f4   :  { %437 = vmatpush.bf16.msra.mxu2 %v428_v14 }
 0x401   :  { %596 = vrot.lane.b32.xlu1 %v481_v10, %s948_s9 }
 0x41b   :  { %534 = vadd.xlane.f32.xlu2 %v533_v49 }
 0x42d   :  { %v420_v18 = vpop.xlane.xlu1 %419 }
 0x42e   :  { %823 = vrcp.f32 %v420_v18 }
 0x434   :  { %v824_v19 = vpop.eup %823 }
 0x435   :  { %v422_v20 = vmul.f32 %v824_v19, %v1098_v42 }
 0x437   :  { %v423_v22 = vpack.c.bf16 %v422_v20, %v422_v20 }
 0x439   :  { %740 = vmatmul.msk.bf16.vlgmr.msra.gmra.mxu2 %vm164_vm3, %v423_v22 }
 0x445   :  { %v229_v23 = vpop.xlane.xlu2 %228 }
 0x446   :  { %825 = vrcp.f32 %v229_v23  ;;  %v802_v23 = vld [vmem:[%s1153_s3] ss:$0 sm:$0xff] }
 0x44b   :  { %v475_v28 = vpop.xlane.xlu0 %474 }
 0x44c   :  { %v826_v24 = vpop.eup %825 }
 0x44d   :  { %v231_v25 = vmul.f32 %v826_v24, %v812_v55  ;;  %v346_v26 = vpop.xlane.xlu2 %345 }
 0x44e   :  { %827 = vrcp.f32 %v346_v26 }
 0x44f   :  { %v232_v21 = vpack.c.bf16 %v231_v25, %v231_v25  ;;  %829 = vrcp.f32 %v475_v28 }
 0x451   :  { %734 = vmatmul.msk.bf16.vlgmr.msrb.gmra.mxu0 %vm164_vm3, %v232_v21 }
 0x454   :  { %v828_v31 = vpop.eup %827 }
 0x455   :  { %v483_v27 = vpop.permute.xlu2 %482  ;;  %v348_v32 = vmul.f32 %v828_v31, %v814_v57  ;;  %v830_v37 = vpop.eup %829 }
 0x456   :  { %v488_v30 = vsel %vm180_vm4, %v483_v27, 0  ;;  %v477_v38 = vmul.f32 %v830_v37, %v1103_v58 }
 0x457   :  { %497 = vmatpush.bf16.msrb.mxu0 %v488_v30  ;;  %v349_v35 = vpack.c.bf16 %v348_v32, %v348_v32 }
 0x458   :  { %v478_v40 = vpack.c.bf16 %v477_v38, %v477_v38 }
 0x45b   :  { %v592_v39 = vpop.xlane.xlu1 %591 }
 0x45c   :  { %831 = vrcp.f32 %v592_v39 }
 0x45e   :  { %v540_v34 = vpop.permute.xlu0 %539 }
 0x45f   :  { %v545_v36 = vsel %vm180_vm4, %v540_v34, 0 }
 0x460   :  { %554 = vmatpush.bf16.msrb.mxu2 %v545_v36 }
 0x461   :  { %738 = vmatmul.msk.bf16.vlgmr.msra.gmra.mxu0 %vm164_vm3, %v349_v35 }
 0x462   :  { %v832_v43 = vpop.eup %831 }
 0x463   :  { %v594_v44 = vmul.f32 %v832_v43, %v818_v5  ;;  %v770_v5 = vld [vmem:[#allocation7 + $0x8] sm:$0xff] }
 0x464   :  { %679 = vmatpush.bf16.msra.mxu1 %v770_v5 }
 0x465   :  { %v595_v46 = vpack.c.bf16 %v594_v44, %v594_v44 }
 0x468   :  { %680 = vmatpush.bf16.msra.mxu1 %v769_v6 }
 0x471   :  { %742 = vmatmul.msk.bf16.vlgmr.msrb.gmra.mxu0 %vm164_vm3, %v478_v40 }
 0x473   :  { %v597_v41 = vpop.permute.xlu1 %596 }
 0x474   :  { %v602_v42 = vsel %vm180_vm4, %v597_v41, 0 }
 0x475   :  { %611 = vmatpush.bf16.msra.mxu0 %v602_v42 }
 0x476   :  { %v310_v33 = vpop.f32.mrf.mxu2 }
 0x47e   :  { %v312_v45 = vpop.f32.mrf.mxu2 }
 0x481   :  { %746 = vmatmul.msk.bf16.vlgmr.msra.gmra.mxu0 %vm164_vm3, %v595_v46 }
 0x48e   :  { %v535_v47 = vpop.xlane.xlu2 %534 }
 0x48f   :  { %833 = vrcp.f32 %v535_v47 }
 0x495   :  { %v834_v48 = vpop.eup %833 }
 0x496   :  { %v537_v50 = vmul.f32 %v834_v48, %v822_v17 }
 0x498   :  { %v538_v51 = vpack.c.bf16 %v537_v50, %v537_v50 }
 0x49a   :  { %744 = vmatmul.msk.bf16.vlgmr.msrb.gmra.mxu2 %vm164_vm3, %v538_v51 }
 0x4bc   :  { %v439_v52 = vpop.f32.mrf.mxu2 }
 0x4c4   :  { %v441_v53 = vpop.f32.mrf.mxu2 }
 0x4ce   :  { %v253_v54 = vpop.f32.mrf.mxu0 }
 0x4d6   :  { %v255_v55 = vpop.f32.mrf.mxu0 }
 0x4de   :  { %v367_v56 = vpop.f32.mrf.mxu0 }
 0x4e6   :  { %v369_v57 = vpop.f32.mrf.mxu0 }
 0x4ee   :  { %v499_v58 = vpop.f32.mrf.mxu0 }
 0x4ef   :  { %v787_v59 = vpack.i.bf16 %v499_v58, %v253_v54 }
 0x4f1   :  { %788 = vrot.lane.b32.xlu2 %v787_v59, %s946_s7 }
 0x4f6   :  { %v501_v60 = vpop.f32.mrf.mxu0 }
 0x4fe   :  { %v613_v61 = vpop.f32.mrf.mxu0 }
 0x4ff   :  { %v797_v62 = vpack.i.bf16 %v613_v61, %v367_v56 }
 0x501   :  { %798 = vrot.lane.b32.xlu1 %v797_v62, %s949_s10 }
 0x506   :  { %v615_v63 = vpop.f32.mrf.mxu0 }
 0x51d   :  { %v556_v0 = vpop.f32.mrf.mxu2 }
 0x51e   :  { %v792_v1 = vpack.i.bf16 %v556_v0, %v310_v33 }
 0x520   :  { %793 = vrot.lane.b32.xlu0 %v792_v1, %s945_s6 }
 0x525   :  { %v558_v2 = vpop.f32.mrf.mxu2 }
 0x54b   :  { %v789_v7 = vpop.permute.xlu2 %788 }
 0x54c   :  { %v791_v8 = vunpack.i.h.bf16 %v789_v7  ;;  %v790_v10 = vunpack.i.l.bf16 %v789_v7 }
 0x54e   :  { %v383_v29 = vsel %vm143_vm1, %v1071_v9, %v790_v10  ;;  %v629_v15 = vsel %vm143_vm1, %v439_v52, %v791_v8 }
 0x573   :  { %v799_v11 = vpop.permute.xlu1 %798 }
 0x574   :  { %v801_v16 = vunpack.i.h.bf16 %v799_v11  ;;  %v800_v17 = vunpack.i.l.bf16 %v799_v11 }
 0x592   :  { %v794_v13 = vpop.permute.xlu0 %793 }
 0x593   :  { %v796_v12 = vunpack.i.h.bf16 %v794_v13  ;;  %v795_v14 = vunpack.i.l.bf16 %v794_v13 }
 0x595   :  { %v630_v49 = vsel %vm97_vm0, %v629_v15, %v796_v12  ;;  %v384_v18 = vsel %vm97_vm0, %v383_v29, %v795_v14 }
 0x596   :  { %v386_v19 = vsel %vm385_vm5, %v384_v18, %v800_v17  ;;  %v631_v20 = vsel %vm385_vm5, %v630_v49, %v801_v16 }
 0x597   :  { %v632_v22 = vpack.c.bf16 %v631_v20, %v386_v19 }
 0x599   :  { %763 = vmatmul.msk.bf16.vlgmr.msra.gmra.mxu1 %vm669_vm6, %v632_v22 }
 0x616   :  { %v682_v24 = vpop.f32.mrf.mxu1 }
 0x617   :  { %v683_v25 = vadd.f32 %v802_v23, %v682_v24 }
 0x619   :  { %687 = vst [vmem:[#allocation8] sm:$0xff] %v683_v25 }
 0x61e   :  { %v684_v9 = vpop.f32.mrf.mxu1 }
 0x61f   :  { %v685_v26 = vadd.f32 %v802_v23, %v684_v9 }
 0x621   :  { %688 = vst [vmem:[#allocation8 + $0x8] sm:$0xff] %v685_v26 }
 0x622   :  { %701 = dma.vmem_to_hbm [thread:$0]  %s694_s14, 256, %s696_s17, [#allocation4], %s938_s23, %s938_s23, %s939_s24  }
 0x623   :  { %935 = dma.done.wait [#allocation4], 256  }
 0x624   :  { %936 = vsyncadd [#allocation4], 4294967040 }
 0x625   :  { %706 = vsyncpa [#allocation3], 1 }
 0x626   :  { %707 = vsyncpa [#allocation6], 1 }
 0x627   :  { %708 = vsyncpa [#allocation4], 1 }

</bundles_post_ra>
